<compile_context>
chip_gen: v7x
topology: tpu7x:2x2x1
jax: 0.10.0
libtpu: 0.0.40
codegen_flags: <defaults>
</compile_context>

<pallas_src>
import functools

import jax
import jax.numpy as jnp
from jax.experimental import pallas as pl
from jax.experimental.pallas import tpu as pltpu


def _se_block_kernel(x_ref, w1_ref, b1_ref, w2_ref, b2_ref, o_ref, *, hw_true):
    # x_ref/o_ref: (tn, C, HW); w1_ref: (C, Cr_pad); b1_ref: (1, Cr_pad)
    # w2_ref: (Cr_pad, C); b2_ref: (1, C)

    # Squeeze: global average pool over the spatial (lane) axis, accumulated
    # in f32.  HW is the true spatial size (no padding), so sum / HW is exact.
    pooled = jnp.sum(x_ref[...].astype(jnp.float32), axis=-1) * (1.0 / hw_true)

    # Excitation MLP (tiny; runs once per block).  Cr is lane-padded with
    # zero weights/biases, so padded columns are exactly relu(0)=0 and the
    # zero rows of w2 keep them out of the second matmul.
    h = jnp.dot(pooled, w1_ref[...], preferred_element_type=jnp.float32)
    h = jnp.maximum(h + b1_ref[...], 0.0)                       # (tn, Cr_pad)
    s = jnp.dot(h, w2_ref[...], preferred_element_type=jnp.float32)
    s = jax.nn.sigmoid(s + b2_ref[...])                         # (tn, C)

    # Rescale: re-read x from the ref (cheap VMEM load; no block-sized live
    # value spanning the MLP) and apply the per-channel gate broadcast over
    # the spatial lanes.
    gate = s.astype(o_ref.dtype)[:, :, None]
    o_ref[...] = (x_ref[...] * gate).astype(o_ref.dtype)


def _round_up(v, m):
    return ((v + m - 1) // m) * m


def _choose_batch_tile(n, bytes_per_sample, budget_bytes=4 * 1024 * 1024):
    """Largest divisor of n whose x block fits the budget, preferring >=2 grid
    steps so Pallas can double-buffer the HBM streams."""
    divisors = [d for d in range(1, n + 1) if n % d == 0]
    fitting = [d for d in divisors if d * bytes_per_sample <= budget_bytes] or [1]
    pipelined = [d for d in fitting if n // d >= 2]
    return max(pipelined) if pipelined else max(fitting)


def se_block(x, w1, b1, w2, b2):
    """x: (N, C, H, W).  w1: (Cr, C), b1: (Cr,), w2: (C, Cr), b2: (C,)
    in PyTorch nn.Linear (out_features, in_features) convention."""
    N, C, H, W = x.shape
    hw = H * W
    Cr = w1.shape[0]
    cr_pad = _round_up(max(Cr, 128), 128)  # avoid masked 2-lane fc1 output

    # Flatten spatial into the lane axis (metadata-only reshape, no copy and
    # no padding: the kernel block covers the full (C, HW) extents).
    xf = x.reshape(N, C, hw)

    # Weights to (in, out) for right-multiplication; zero-pad the squeeze dim.
    w1_t = jnp.zeros((C, cr_pad), jnp.float32).at[:, :Cr].set(
        jnp.asarray(w1, jnp.float32).T)
    b1_p = jnp.zeros((1, cr_pad), jnp.float32).at[:, :Cr].set(
        jnp.asarray(b1, jnp.float32).reshape(1, -1))
    w2_t = jnp.zeros((cr_pad, C), jnp.float32).at[:Cr, :].set(
        jnp.asarray(w2, jnp.float32).T)
    b2_p = jnp.asarray(b2, jnp.float32).reshape(1, -1)

    itemsize = jnp.dtype(x.dtype).itemsize
    bytes_per_sample = C * _round_up(hw, 128) * itemsize   # VMEM layout bound
    tn = _choose_batch_tile(N, bytes_per_sample)
    grid = (N // tn,)

    kernel = functools.partial(_se_block_kernel, hw_true=float(hw))

    x_spec = pl.BlockSpec((tn, C, hw), lambda i: (i, 0, 0))
    # Constant index_maps: params are fetched once and stay VMEM-resident.
    w1_spec = pl.BlockSpec((C, cr_pad), lambda i: (0, 0))
    b1_spec = pl.BlockSpec((1, cr_pad), lambda i: (0, 0))
    w2_spec = pl.BlockSpec((cr_pad, C), lambda i: (0, 0))
    b2_spec = pl.BlockSpec((1, C), lambda i: (0, 0))

    param_bytes = 4 * (w1_t.size + b1_p.size + w2_t.size + b2_p.size)
    cost = pl.CostEstimate(
        flops=int(2 * N * C * hw + 4 * N * C * cr_pad),
        transcendentals=int(N * C),
        bytes_accessed=int(2 * N * C * hw * itemsize + param_bytes),
    )

    out = pl.pallas_call(
        kernel,
        out_shape=jax.ShapeDtypeStruct((N, C, hw), x.dtype),
        grid_spec=pltpu.PrefetchScalarGridSpec(
            num_scalar_prefetch=0,
            grid=grid,
            in_specs=[x_spec, w1_spec, b1_spec, w2_spec, b2_spec],
            out_specs=x_spec,
        ),
        compiler_params=pltpu.CompilerParams(
            dimension_semantics=("parallel",),
            vmem_limit_bytes=32 * 1024 * 1024,
        ),
        cost_estimate=cost,
    )(xf, w1_t, b1_p, w2_t, b2_p)

    return out.reshape(N, C, H, W)


def se_block_ref(x, w1, b1, w2, b2):
    """Pure-JAX reference mirroring the PyTorch forward."""
    N, C, H, W = x.shape
    pooled = jnp.mean(x, axis=(2, 3))                  # squeeze + flatten
    h = jnp.maximum(pooled @ w1.T + b1, 0.0)           # fc1 + relu
    s = jax.nn.sigmoid(h @ w2.T + b2)                  # fc2 + sigmoid
    return x * s.reshape(N, C, 1, 1)


if __name__ == "__main__":
    # Small shapes consistent with SEBlock(in_channels=8, squeeze_ratio=4)
    N, C, H, W = 2, 8, 16, 16
    squeeze_ratio = 4
    Cr = C // squeeze_ratio

    key = jax.random.PRNGKey(0)
    kx, k1, k2, k3, k4 = jax.random.split(key, 5)

    x = jax.random.normal(kx, (N, C, H, W), dtype=jnp.float32)
    # nn.Linear shapes: (out_features, in_features)
    w1 = jax.random.normal(k1, (Cr, C), dtype=jnp.float32) * 0.1
    b1 = jax.random.normal(k2, (Cr,), dtype=jnp.float32) * 0.1
    w2 = jax.random.normal(k3, (C, Cr), dtype=jnp.float32) * 0.1
    b2 = jax.random.normal(k4, (C,), dtype=jnp.float32) * 0.1

    out = jax.block_until_ready(se_block(x, w1, b1, w2, b2))
    ref = se_block_ref(x, w1, b1, w2, b2)

    assert out.shape == (N, C, H, W)
    assert jnp.allclose(out, ref, atol=1e-5, rtol=1e-5), "mismatch vs reference"

    print("KERNEL_OK")
</pallas_src>

<mosaic_0001>
module attributes {stable_mosaic.version = 11 : i64} {
  func.func @_se_block_kernel(%arg0: i32, %arg1: memref<1x8x256xf32, #tpu.memory_space<vmem>>, %arg2: memref<8x128xf32, #tpu.memory_space<vmem>>, %arg3: memref<1x128xf32, #tpu.memory_space<vmem>>, %arg4: memref<128x8xf32, #tpu.memory_space<vmem>>, %arg5: memref<1x8xf32, #tpu.memory_space<vmem>>, %arg6: memref<1x8x256xf32, #tpu.memory_space<vmem>>) attributes {dimension_semantics = [#tpu.dimension_semantics<parallel>], iteration_bounds = array<i64: 2>, scalar_prefetch = 0 : i64, scratch_operands = 0 : i64, tpu.core_type = #tpu.core_type<tc>, window_params = [{transform_indices = @transform_0, window_bounds = array<i64: 1, 8, 256>}, {pipeline_mode = #tpu.pipeline_mode<synchronous>, transform_indices = @transform_1, window_bounds = array<i64: 8, 128>}, {pipeline_mode = #tpu.pipeline_mode<synchronous>, transform_indices = @transform_2, window_bounds = array<i64: 1, 128>}, {pipeline_mode = #tpu.pipeline_mode<synchronous>, transform_indices = @transform_3, window_bounds = array<i64: 128, 8>}, {pipeline_mode = #tpu.pipeline_mode<synchronous>, transform_indices = @transform_4, window_bounds = array<i64: 1, 8>}, {transform_indices = @transform_5, window_bounds = array<i64: 1, 8, 256>}]} {
    %c0 = arith.constant 0 : index
    %c0_0 = arith.constant 0 : index
    %c0_1 = arith.constant 0 : index
    %0 = vector.load %arg1[%c0, %c0_0, %c0_1] : memref<1x8x256xf32, #tpu.memory_space<vmem>>, vector<1x8x256xf32>
    %cst = arith.constant dense<0.000000e+00> : vector<1x8xf32>
    %1 = vector.multi_reduction <add>, %0, %cst [2] : vector<1x8x256xf32> to vector<1x8xf32>
    %cst_2 = arith.constant 3.906250e-03 : f32
    %2 = vector.broadcast %cst_2 : f32 to vector<1x8xf32>
    %3 = arith.mulf %1, %2 : vector<1x8xf32>
    %c0_3 = arith.constant 0 : index
    %c0_4 = arith.constant 0 : index
    %4 = vector.load %arg2[%c0_3, %c0_4] : memref<8x128xf32, #tpu.memory_space<vmem>>, vector<8x128xf32>
    %cst_5 = arith.constant dense<0.000000e+00> : vector<1x128xf32>
    %5 = tpu.matmul %3, %4, %cst_5 {dimension_numbers = #tpu.dot_dimension_numbers<[1], [0], [0], [1], [0, 0, 1, 1], [], []>} : vector<1x8xf32>, vector<8x128xf32>, vector<1x128xf32> -> vector<1x128xf32>
    %c0_6 = arith.constant 0 : index
    %c0_7 = arith.constant 0 : index
    %6 = vector.load %arg3[%c0_6, %c0_7] : memref<1x128xf32, #tpu.memory_space<vmem>>, vector<1x128xf32>
    %7 = arith.addf %5, %6 : vector<1x128xf32>
    %cst_8 = arith.constant 0.000000e+00 : f32
    %8 = vector.broadcast %cst_8 : f32 to vector<1x128xf32>
    %9 = arith.maximumf %7, %8 : vector<1x128xf32>
    %c0_9 = arith.constant 0 : index
    %c0_10 = arith.constant 0 : index
    %10 = vector.load %arg4[%c0_9, %c0_10] : memref<128x8xf32, #tpu.memory_space<vmem>>, vector<128x8xf32>
    %cst_11 = arith.constant dense<0.000000e+00> : vector<1x8xf32>
    %11 = tpu.matmul %9, %10, %cst_11 {dimension_numbers = #tpu.dot_dimension_numbers<[1], [0], [0], [1], [0, 0, 1, 1], [], []>} : vector<1x128xf32>, vector<128x8xf32>, vector<1x8xf32> -> vector<1x8xf32>
    %c0_12 = arith.constant 0 : index
    %c0_13 = arith.constant 0 : index
    %12 = vector.load %arg5[%c0_12, %c0_13] : memref<1x8xf32, #tpu.memory_space<vmem>>, vector<1x8xf32>
    %13 = arith.addf %11, %12 : vector<1x8xf32>
    %14 = arith.negf %13 : vector<1x8xf32>
    %15 = math.exp %14 : vector<1x8xf32>
    %cst_14 = arith.constant 1.000000e+00 : f32
    %16 = vector.broadcast %cst_14 : f32 to vector<1x8xf32>
    %17 = arith.addf %16, %15 : vector<1x8xf32>
    %18 = arith.divf %16, %17 : vector<1x8xf32>
    %19 = vector.shape_cast %18 : vector<1x8xf32> to vector<1x8x1xf32>
    %c0_15 = arith.constant 0 : index
    %c0_16 = arith.constant 0 : index
    %c0_17 = arith.constant 0 : index
    %20 = vector.load %arg1[%c0_15, %c0_16, %c0_17] : memref<1x8x256xf32, #tpu.memory_space<vmem>>, vector<1x8x256xf32>
    %21 = vector.broadcast %19 : vector<1x8x1xf32> to vector<1x8x256xf32>
    %22 = arith.mulf %20, %21 : vector<1x8x256xf32>
    %c0_18 = arith.constant 0 : index
    %c0_19 = arith.constant 0 : index
    %c0_20 = arith.constant 0 : index
    %23 = vector.load %arg6[%c0_18, %c0_19, %c0_20] : memref<1x8x256xf32, #tpu.memory_space<vmem>>, vector<1x8x256xf32>
    tpu.vector_store %arg6[%c0_18, %c0_19, %c0_20], %22 {strides = array<i32>} : memref<1x8x256xf32, #tpu.memory_space<vmem>>, vector<1x8x256xf32>,
    return
  }
  func.func @transform_0(%arg0: i32) -> (i32, i32, i32) {
    %c0_i32 = arith.constant 0 : i32
    %c0_i32_0 = arith.constant 0 : i32
    %c0_i32_1 = arith.constant 0 : i32
    return %arg0, %c0_i32, %c0_i32_0 : i32, i32, i32
  }
  func.func @transform_1(%arg0: i32) -> (i32, i32) {
    %c0_i32 = arith.constant 0 : i32
    %c0_i32_0 = arith.constant 0 : i32
    %c0_i32_1 = arith.constant 0 : i32
    return %c0_i32, %c0_i32_0 : i32, i32
  }
  func.func @transform_2(%arg0: i32) -> (i32, i32) {
    %c0_i32 = arith.constant 0 : i32
    %c0_i32_0 = arith.constant 0 : i32
    %c0_i32_1 = arith.constant 0 : i32
    return %c0_i32, %c0_i32_0 : i32, i32
  }
  func.func @transform_3(%arg0: i32) -> (i32, i32) {
    %c0_i32 = arith.constant 0 : i32
    %c0_i32_0 = arith.constant 0 : i32
    %c0_i32_1 = arith.constant 0 : i32
    return %c0_i32, %c0_i32_0 : i32, i32
  }
  func.func @transform_4(%arg0: i32) -> (i32, i32) {
    %c0_i32 = arith.constant 0 : i32
    %c0_i32_0 = arith.constant 0 : i32
    %c0_i32_1 = arith.constant 0 : i32
    return %c0_i32, %c0_i32_0 : i32, i32
  }
  func.func @transform_5(%arg0: i32) -> (i32, i32, i32) {
    %c0_i32 = arith.constant 0 : i32
    %c0_i32_0 = arith.constant 0 : i32
    %c0_i32_1 = arith.constant 0 : i32
    return %arg0, %c0_i32, %c0_i32_0 : i32, i32, i32
  }
}

</mosaic_0001>

<bundles_post_ra>
// kernel: tpu_custom_call.1
= control target key start
LH: loop header
LB: loop body
LE: loop exit
PB: predicated region body
PF: predicated region fallthrough
CT: control target
= control target key end

     0   :  { %10 = vsyncpa [#allocation3], 0  ;;  %s898_s0 = inlined_call_operand.vmem [shape: f32[2,8,256], index: 0, kind: input, shape index: {}]   ;;  %s899_s1 = inlined_call_operand.vmem [shape: f32[8,128], index: 1, kind: input, shape index: {}]   ;;  %s900_s2 = inlined_call_operand.vmem [shape: f32[1,128], index: 2, kind: input, shape index: {}]   ;;  %s901_s3 = inlined_call_operand.vmem [shape: f32[128,8], index: 3, kind: input, shape index: {}]   ;;  %s902_s4 = inlined_call_operand.vmem [shape: f32[1,8], index: 4, kind: input, shape index: {}]   ;;  %s903_s5 = inlined_call_operand.hbm [shape: f32[2,8,256], index: 5, kind: output, shape index: {}]  }
   0x1   :  { %12 = vsyncpa [#allocation3 + $0x1], 0  ;;  %s733_s18 = smov 0   ;;  %s735_s19 = smov 0  }
   0x2   :  { %s737_s20 = smov 0   ;;  %s739_s21 = smov 0  }
   0x3 LB: > { %s754_s22 = sadd.s32 4294967295, %s697_s21   ;;  %s490_s23 = sadd.s32 4294967294, %s697_s21   ;;  %s697_s21 = sphi %s739_s21, %s909_s21   ;;  %s693_s20 = sphi %s737_s20, %s908_s20   ;;  %s689_s19 = sphi %s735_s19, %s907_s19   ;;  %s685_s18 = sphi %s733_s18, %s906_s18  }
   0x4   : > { %s758_s24 = sadd.s32 1, %s697_s21   ;;  %s135_s25 = sadd.s32 1, %s693_s20 }
   0x5   : > { %s132_s26 = ssub.s32 %s697_s21, %s758_s24  ;;  %p145_p0 = scmp.ne.s32.totalorder %s693_s20, %s689_s19 }
   0x6   : > { %p133_p1 = scmp.eq.s32.totalorder %s132_s26, 0  ;;  %p146_p2 = scmp.eq.s32.totalorder %s754_s22, 1 }
   0x7   : > { %p151_p3 = scmp.ne.s32.totalorder %s689_s19, %s685_s18  ;;  %p152_p4 = scmp.eq.s32.totalorder %s490_s23, 1 }
   0x8   : > { %s769_s27 = scalar_select %p133_p1, %s693_s20, %s135_s25  }
   0x9   : > { %p771_p5 = por %p146_p2, %p145_p0  ;;  %p775_p6 = por %p152_p4, %p151_p3 }
   0xa   : > { %p493_p7 = scmp.ge.s32.totalorder %s697_s21, 1  ;;  %p190_p8 = scmp.lt.s32.totalorder %s697_s21, 3 }
   0xc   : > { %p191_p9 = pnand %p493_p7, %p190_p8 }
   0xd   : > { %p218_p10 = scmp.lt.s32.totalorder (!%p191_p9), %s754_s22, 1  ;;  %v699_v3 = vmov (!%p191_p9), 0.0   ;;  %v229_v4 = vld [vmem:[%s899_s1] sm:$0xff] (!%p191_p9)  ;;  %vm700_vm0 = vmmov (!%p191_p9), 0   ;;  %v313_v6 = vld [vmem:[%s901_s3 + $0x8] sm:$0xff] (!%p191_p9)  ;;  %v314_v7 = vld [vmem:[%s901_s3 + $0x10] sm:$0xff] (!%p191_p9)  ;;  %v232_v27 = vlaneseq (!%p191_p9) }
   0xe   : > { %194 = sbr.rel (%p191_p9) target bundleno = 763 (0x2fb), region = 40  ;;  %525 = vmatprep.subr.mxu0 (!%p191_p9), %v699_v3  ;;  %527 = vmatprep.mubr.msk.f32.mxu0 (!%p191_p9), %vm700_vm0, %v699_v3  ;;  %v312_v5 = vld [vmem:[%s901_s3] sm:$0xff] (!%p191_p9)  ;;  %v701_v8 = vmov (!%p191_p9), 0.0|0.0   ;;  %v315_v10 = vld [vmem:[%s901_s3 + $0x18] sm:$0xff] (!%p191_p9)  ;;  %v317_v13 = vld [vmem:[%s901_s3 + $0x28] sm:$0xff] (!%p191_p9)  ;;  %vm238_vm1 = vcmask (!%p191_p9), 64512  }
   0xf   : > { %526 = vmatpush3.msra.mxu0 (!%p191_p9), %v229_v4  ;;  %562 = vmatprep.mubr.msk.f32.mxu1 (!%p191_p9), %vm700_vm0, %v699_v3  ;;  %v566_v9 = vpack.c.bf16 (!%p191_p9), %v313_v6, %v312_v5  ;;  %v569_v11 = vpack.c.bf16 (!%p191_p9), %v315_v10, %v314_v7  ;;  %v316_v12 = vld [vmem:[%s901_s3 + $0x20] sm:$0xff] (!%p191_p9)  ;;  %v318_v15 = vld [vmem:[%s901_s3 + $0x30] sm:$0xff] (!%p191_p9)  ;;  %v319_v16 = vld [vmem:[%s901_s3 + $0x38] sm:$0xff] (!%p191_p9)  ;;  %v233_v28 = vand.u32 (!%p191_p9), 127, %v232_v27  ;;  %v235_v29 = vshrl.u32 (!%p191_p9), %v232_v27, 7  ;;  %s215_s16 = sand.u32 (!%p191_p9), 1, %s689_s19  }
  0x10   : > { %565 = vmatprep.subr.bf16.mxu1 (!%p191_p9), %v701_v8  ;;  %v572_v14 = vpack.c.bf16 (!%p191_p9), %v317_v13, %v316_v12  ;;  %v575_v17 = vpack.c.bf16 (!%p191_p9), %v319_v16, %v318_v15  ;;  %v320_v18 = vld [vmem:[%s901_s3 + $0x40] sm:$0xff] (!%p191_p9)  ;;  %v321_v19 = vld [vmem:[%s901_s3 + $0x48] sm:$0xff] (!%p191_p9)  ;;  %v322_v21 = vld [vmem:[%s901_s3 + $0x50] sm:$0xff] (!%p191_p9)  ;;  %s494_s17 = sshll.u32 (!%p191_p9), %s215_s16, 4  ;;  %s505_s23 = sshll.u32 (!%p191_p9), %s754_s22, 8 }
  0x11   : > { %567 = vmatpush3.bf16.msra.mxu1 (!%p191_p9), %v566_v9  ;;  %v578_v20 = vpack.c.bf16 (!%p191_p9), %v321_v19, %v320_v18  ;;  %v323_v22 = vld [vmem:[%s901_s3 + $0x58] sm:$0xff] (!%p191_p9)  ;;  %v324_v24 = vld [vmem:[%s901_s3 + $0x60] sm:$0xff] (!%p191_p9)  ;;  %v325_v25 = vld [vmem:[%s901_s3 + $0x68] sm:$0xff] (!%p191_p9)  ;;  %v236_v30 = vsub.s32 (!%p191_p9), %v233_v28, %v235_v29  ;;  %v407_v49 = vsub.s32 (!%p191_p9), 0, %v235_v29  ;;  %s217_s25 = scalar_lea.vmem (!%p191_p9), [#allocation2], %s494_s17  ;;  %s856_s7 = scalar_lea.hbm (!%p191_p9), %s903_s5, %s505_s23 }
  0x12   : > { %568 = vmatprep.subr.bf16.mxu1 (!%p191_p9), %v701_v8  ;;  %v581_v23 = vpack.c.bf16 (!%p191_p9), %v323_v22, %v322_v21  ;;  %v584_v26 = vpack.c.bf16 (!%p191_p9), %v325_v25, %v324_v24  ;;  %v326_v34 = vld [vmem:[%s901_s3 + $0x70] sm:$0xff] (!%p191_p9)  ;;  %v327_v35 = vld [vmem:[%s901_s3 + $0x78] sm:$0xff] (!%p191_p9)  ;;  %v230_v37 = vld [vmem:[%s900_s2] sm:$0x1] (!%p191_p9)  ;;  %s431_s26 = sshll.u32 (!%p191_p9), %s217_s25, 4  ;;  %s858_s26 = int_to_ptr.vmem [resolvable:$true] %s431_s26 }
  0x13   : > { %v587_v36 = vpack.c.bf16 (!%p191_p9), %v327_v35, %v326_v34  ;;  %v328_v42 = vld [vmem:[%s902_s4] sm:$0x1] (!%p191_p9)  ;;  %s635_s8 = scalar_lea.vmem (!%p191_p9), %s858_s26, 256 }
  0x14   : > { %p636_p11 = scmp.ne.s32.totalorder (!%p191_p9), %s858_s26, %s635_s8 }
  0x15   : > { %s219_s30 = scalar_select %p218_p10, %s754_s22, 1  ;;  %570 = vmatpush3.bf16.msra.mxu1 %v569_v11 }
  0x16   : > { %571 = vmatprep.subr.bf16.mxu1 %v701_v8  ;;  %s417_s22 = scalar_lea.sflag [#allocation3], %s215_s16  ;;  %p637_p12 = pnand %p636_p11, %p771_p5 }
  0x17   : > { %s504_s6 = sshll.u32 %s219_s30, 4 }
  0x18   : > { %s222_s9 = scalar_lea.vmem %s898_s0, %s504_s6  ;;  %p638_p13 = pneg %p637_p12 }
  0x19   : > { %v786_v0 = vld [vmem:[%s222_s9] sm:$0xff]  ;;  %v788_v1 = vld [vmem:[%s222_s9 + $0x8] sm:$0xff]  ;;  %573 = vmatpush3.bf16.msra.mxu1 %v572_v14  ;;  %s702_s9 = smov [#allocation2]  }
  0x1a   : > { %v225_v2 = vadd.f32 %v788_v1, %v786_v0  ;;  %574 = vmatprep.subr.bf16.mxu1 %v701_v8  ;;  %s639_s10 = sshll.u32 %s702_s9, 4  ;;  %s640_s10 = int_to_ptr.vmem [resolvable:$false] %s639_s10 }
  0x1b   : > { %s641_s11 = scalar_lea.vmem %s640_s10, 512  ;;  %p642_p0 = scmp.lt.s32.totalorder %s858_s26, %s640_s10 }
  0x1c   : > { %226 = vadd.xlane.f32.xlu0 %v225_v2  ;;  %p643_p1 = scmp.lt.s32.totalorder %s641_s11, %s635_s8 }
  0x1d   : > { %576 = vmatpush3.bf16.msra.mxu1 %v575_v17 }
  0x1e   : > { %577 = vmatprep.subr.bf16.mxu1 %v701_v8  ;;  %p644_p2 = por %p643_p1, %p642_p0 }
  0x20   : > { %p645_p3 = pnand %p644_p2, %p638_p13 }
  0x21   : > { %579 = vmatpush3.bf16.msra.mxu1 %v578_v20 }
  0x22   : > { %580 = vmatprep.subr.bf16.mxu1 %v701_v8 }
  0x25   : > { %582 = vmatpush3.bf16.msra.mxu1 %v581_v23 }
  0x26   : > { %583 = vmatprep.subr.bf16.mxu1 %v701_v8 }
  0x29   : > { %585 = vmatpush3.bf16.msra.mxu1 %v584_v26 }
  0x2a   : > { %586 = vmatprep.subr.bf16.mxu1 %v701_v8 }
  0x2d   : > { %588 = vmatpush3.bf16.msra.mxu1 %v587_v36 }
  0xa9   : > { %v227_v31 = vpop.xlane.xlu0 %226 }
  0xaa   : > { %v228_v32 = vmul.f32 0.00390625, %v227_v31 }
  0xac   : > { %v237_v33 = vrot.slane %v228_v32, %v236_v30 }
  0xae   : > { %528 = vmatmul.mubr.msk.f32.vlgmr.msra.gmra.mrb[0].mxu0 %vm238_vm1, %v237_v33 }
 0x181   : > { %v307_v38 = vpop.f32.mrb[0].mxu0 }
 0x182   : > { %v308_v39 = vadd.f32 %v307_v38, %v230_v37  ;;  %v529_v40 = vpop.f32.mrb[1].mxu0 }
 0x184   : > { %v311_v41 = vmax.f32 %v308_v39, 0.0 }
 0x186   : > { %563 = vmatmul.mubr.f32.vlgmr.msra.gmra.mrb[0].mxu1 %v311_v41 }
 0x259   : > { %v395_v43 = vpop.f32.mrb[0].mxu1 }
 0x25a   : > { %v396_v44 = vadd.f32 %v395_v43, %v328_v42  ;;  %v564_v45 = vpop.f32.mrb[1].mxu1 }
 0x25c   : > { %v498_v46 = vmul.f32 -1.442695, %v396_v44 }
 0x25e   : > { %631 = vpow2.f32 %v498_v46 }
 0x268   : > { %v632_v47 = vpop.eup %631 }
 0x269   : > { %v402_v48 = vadd.f32 1.0, %v632_v47 }
 0x26b   : > { %633 = vrcp.f32 %v402_v48 }
 0x275   : > { %v634_v50 = vpop.eup %633 }
 0x276   : > { %v408_v51 = vrot.slane %v634_v50, %v407_v49 }
 0x278   : > { %410 = vbcast.lane.b32.xlu0 %v408_v51, 256 }
 0x2ea   : > { %v411_v52 = vpop.permute.xlu0 %410 }
 0x2eb   : > { %v412_v53 = vmul.f32 %v411_v52, %v786_v0  ;;  %v413_v54 = vmul.f32 %v411_v52, %v788_v1 }
 0x2ed   : > { %414 = vst [vmem:[%s217_s25] sm:$0xff] %v412_v53  ;;  %415 = vst [vmem:[%s217_s25 + $0x8] sm:$0xff] %v413_v54 }
 0x2ee   : > { %648 = shalt.err (!%p645_p3)
}
 0x2ef   : > { %s649_s12 = scalar_lea.hbm %s856_s7, 256  ;;  %s653_s15 = scalar_lea.hbm %s903_s5, 512 }
 0x2f0   : > { %p650_p4 = scmp.ne.s32.totalorder %s856_s7, %s649_s12  ;;  %p654_p9 = scmp.lt.u32.totalorder %s856_s7, %s903_s5 }
 0x2f1   : > { %p655_p10 = scmp.lt.u32.totalorder %s653_s15, %s649_s12  ;;  %p657_p12 = scmp.lt.u32.totalorder %s649_s12, %s856_s7 }
 0x2f2   : > { %p651_p7 = pnand %p650_p4, %p771_p5 }
 0x2f3   : > { %p656_p11 = por %p655_p10, %p654_p9 }
 0x2f4   : > { %p652_p8 = pneg %p651_p7 }
 0x2f5   : > { %p658_p13 = por %p657_p12, %p656_p11 }
 0x2f7   : > { %p659_p0 = pnand %p658_p13, %p652_p8 }
 0x2f9   : > { %662 = shalt.err (!%p659_p0)
}
 0x2fa   : > { %589 = dma.vmem_to_hbm [thread:$0]  (%p771_p5), %s858_s26, 256, %s856_s7, %s417_s22  }
 0x2fb PF: > { %p595_p1 = scmp.ge.s32.totalorder %s697_s21, 2  ;;  %s443_s23 = sand.u32 1, %s685_s18  }
 0x2fc   : > { %s444_s25 = scalar_lea.sflag [#allocation3], %s443_s23 }
 0x2fd   : > { %p592_p2 = pnand %p595_p1, %p775_p6 }
 0x2ff   : > { %680 = dma.done.wait (!%p592_p2), %s444_s25, 256  }
 0x300   : > { %682 = vsyncadd (!%p592_p2), %s444_s25, 4294967040  ;;  %p15_p3 = scmp.ge.s32.totalorder %s758_s24, 4   ;;  %s906_s18 = smov %s689_s19 }
 0x301   : > { %s907_s19 = smov %s693_s20  ;;  %s908_s20 = smov %s769_s27 }
 0x302   : > { %s909_s21 = smov %s758_s24  ;;  %17 = sbr.rel (!%p15_p3) target bundleno = 3 (0x3), region = 75 }
 0x309   :  { %449 = vsyncpa [#allocation3], 1 }
 0x30a   :  { %451 = vsyncpa [#allocation3 + $0x1], 1 }

</bundles_post_ra>
